<compile_context>
chip_gen: v6e
topology: v6e:2x2x1
jax: 0.10.0
libtpu: 0.0.40
codegen_flags: <defaults>
</compile_context>

<pallas_src>
import jax
import jax.numpy as jnp
from jax import lax
from jax.experimental import pallas as pl
from jax.experimental.pallas import tpu as pltpu

EPS = 1e-5  # BatchNorm1d default eps
IN_DIM = 10
OUT_DIM = 10


# ----------------------------- Pallas kernel ------------------------------- #

def _fused_fc_bn_kernel(x_ref, w_ref, o_ref):
    """out = batchnorm(x @ w) with batch statistics, all operands in VMEM.

    Bias omitted on purpose: it cancels against the BN mean subtraction.
    """
    x = x_ref[...]            # (N, 10) f32
    w = w_ref[...]            # (10, 10) f32

    # Linear on the VPU: K=10 unrolled f32 multiply-accumulate (exact f32;
    # avoids the multi-pass HIGHEST-precision MXU path for a tiny matmul).
    y = x[:, 0:1] * w[0:1, :]
    for k in range(1, IN_DIM):
        y = y + x[:, k:k + 1] * w[k:k + 1, :]

    # BatchNorm1d (training mode / no running stats): per-feature batch mean
    # and *biased* variance over the batch axis, then normalize.  No affine.
    n_rows = y.shape[0]
    inv_n = jnp.float32(1.0 / n_rows)
    mean = jnp.sum(y, axis=0, keepdims=True) * inv_n
    centered = y - mean
    var = jnp.sum(centered * centered, axis=0, keepdims=True) * inv_n
    o_ref[...] = centered * lax.rsqrt(var + jnp.float32(EPS))


# ------------------------------- Wrapper ------------------------------------ #

@jax.jit
def buffer_model3_forward(x, params):
    """x: (N, 10) float32 -> (N, 10) float32."""
    x = x.astype(jnp.float32)
    n, _ = x.shape
    n_out = params["w"].shape[1]
    return pl.pallas_call(
        _fused_fc_bn_kernel,
        out_shape=jax.ShapeDtypeStruct((n, n_out), jnp.float32),
        # Whole arrays, no grid: everything fits in VMEM with enormous margin
        # on v5e/v6e (128 MiB) and v7x (64 MiB).
        in_specs=[pl.BlockSpec(memory_space=pltpu.MemorySpace.VMEM)] * 2,
        out_specs=pl.BlockSpec(memory_space=pltpu.MemorySpace.VMEM),
    )(x, params["w"])


# ------------------------------ Parameters ---------------------------------- #

def init_params(key):
    """Deterministic synthetic Linear(10, 10) weight.

    Stored as w: (in, out) so the kernel does x @ w (PyTorch equivalent:
    w_torch[o, i] == w[i, o]).  The Linear bias is intentionally not created:
    BatchNorm with batch statistics and no affine makes any per-feature bias
    mathematically irrelevant to the module output.
    """
    bound = 1.0 / jnp.sqrt(float(IN_DIM))
    w = jax.random.uniform(key, (IN_DIM, OUT_DIM), jnp.float32, -bound, bound)
    return dict(w=w)


# --------------------------------- Main -------------------------------------- #

if __name__ == "__main__":
    key = jax.random.PRNGKey(0)
    k_x, k_p = jax.random.split(key)

    # Batch of 8 rows of 10 features (INPUT_DIM = (10,)); 8 fills the sublane dim.
    x = jax.random.normal(k_x, (8, IN_DIM), dtype=jnp.float32)
    params = init_params(k_p)

    out = buffer_model3_forward(x, params)
    out = jax.block_until_ready(out)
    assert out.shape == (8, OUT_DIM) and out.dtype == jnp.float32

    # Sanity: batch-normalized output has ~zero per-feature mean, ~unit variance.
    col_mean = jnp.max(jnp.abs(jnp.mean(out, axis=0)))
    col_var = jnp.max(jnp.abs(jnp.var(out, axis=0) - 1.0))
    assert float(col_mean) < 1e-4 and float(col_var) < 1e-2

    print("KERNEL_OK")
</pallas_src>

<mosaic_0001>
module attributes {stable_mosaic.version = 11 : i64} {
  func.func @_fused_fc_bn_kernel(%arg0: memref<8x10xf32, #tpu.memory_space<vmem>>, %arg1: memref<10x10xf32, #tpu.memory_space<vmem>>, %arg2: memref<8x10xf32, #tpu.memory_space<vmem>>) attributes {dimension_semantics = [], scalar_prefetch = 0 : i64, scratch_operands = 0 : i64, tpu.core_type = #tpu.core_type<tc>} {
    %c0 = arith.constant 0 : index
    %c0_0 = arith.constant 0 : index
    %0 = vector.load %arg0[%c0, %c0_0] : memref<8x10xf32, #tpu.memory_space<vmem>>, vector<8x10xf32>
    %c0_1 = arith.constant 0 : index
    %c0_2 = arith.constant 0 : index
    %1 = vector.load %arg1[%c0_1, %c0_2] : memref<10x10xf32, #tpu.memory_space<vmem>>, vector<10x10xf32>
    %2 = vector.extract_strided_slice %0 {offsets = [0, 0], sizes = [8, 1], strides = [1, 1]} : vector<8x10xf32> to vector<8x1xf32>
    %3 = vector.extract_strided_slice %1 {offsets = [0, 0], sizes = [1, 10], strides = [1, 1]} : vector<10x10xf32> to vector<1x10xf32>
    %4 = vector.broadcast %2 : vector<8x1xf32> to vector<8x10xf32>
    %5 = vector.broadcast %3 : vector<1x10xf32> to vector<8x10xf32>
    %6 = arith.mulf %4, %5 : vector<8x10xf32>
    %7 = vector.extract_strided_slice %0 {offsets = [0, 1], sizes = [8, 1], strides = [1, 1]} : vector<8x10xf32> to vector<8x1xf32>
    %8 = vector.extract_strided_slice %1 {offsets = [1, 0], sizes = [1, 10], strides = [1, 1]} : vector<10x10xf32> to vector<1x10xf32>
    %9 = vector.broadcast %7 : vector<8x1xf32> to vector<8x10xf32>
    %10 = vector.broadcast %8 : vector<1x10xf32> to vector<8x10xf32>
    %11 = arith.mulf %9, %10 : vector<8x10xf32>
    %12 = arith.addf %6, %11 : vector<8x10xf32>
    %13 = vector.extract_strided_slice %0 {offsets = [0, 2], sizes = [8, 1], strides = [1, 1]} : vector<8x10xf32> to vector<8x1xf32>
    %14 = vector.extract_strided_slice %1 {offsets = [2, 0], sizes = [1, 10], strides = [1, 1]} : vector<10x10xf32> to vector<1x10xf32>
    %15 = vector.broadcast %13 : vector<8x1xf32> to vector<8x10xf32>
    %16 = vector.broadcast %14 : vector<1x10xf32> to vector<8x10xf32>
    %17 = arith.mulf %15, %16 : vector<8x10xf32>
    %18 = arith.addf %12, %17 : vector<8x10xf32>
    %19 = vector.extract_strided_slice %0 {offsets = [0, 3], sizes = [8, 1], strides = [1, 1]} : vector<8x10xf32> to vector<8x1xf32>
    %20 = vector.extract_strided_slice %1 {offsets = [3, 0], sizes = [1, 10], strides = [1, 1]} : vector<10x10xf32> to vector<1x10xf32>
    %21 = vector.broadcast %19 : vector<8x1xf32> to vector<8x10xf32>
    %22 = vector.broadcast %20 : vector<1x10xf32> to vector<8x10xf32>
    %23 = arith.mulf %21, %22 : vector<8x10xf32>
    %24 = arith.addf %18, %23 : vector<8x10xf32>
    %25 = vector.extract_strided_slice %0 {offsets = [0, 4], sizes = [8, 1], strides = [1, 1]} : vector<8x10xf32> to vector<8x1xf32>
    %26 = vector.extract_strided_slice %1 {offsets = [4, 0], sizes = [1, 10], strides = [1, 1]} : vector<10x10xf32> to vector<1x10xf32>
    %27 = vector.broadcast %25 : vector<8x1xf32> to vector<8x10xf32>
    %28 = vector.broadcast %26 : vector<1x10xf32> to vector<8x10xf32>
    %29 = arith.mulf %27, %28 : vector<8x10xf32>
    %30 = arith.addf %24, %29 : vector<8x10xf32>
    %31 = vector.extract_strided_slice %0 {offsets = [0, 5], sizes = [8, 1], strides = [1, 1]} : vector<8x10xf32> to vector<8x1xf32>
    %32 = vector.extract_strided_slice %1 {offsets = [5, 0], sizes = [1, 10], strides = [1, 1]} : vector<10x10xf32> to vector<1x10xf32>
    %33 = vector.broadcast %31 : vector<8x1xf32> to vector<8x10xf32>
    %34 = vector.broadcast %32 : vector<1x10xf32> to vector<8x10xf32>
    %35 = arith.mulf %33, %34 : vector<8x10xf32>
    %36 = arith.addf %30, %35 : vector<8x10xf32>
    %37 = vector.extract_strided_slice %0 {offsets = [0, 6], sizes = [8, 1], strides = [1, 1]} : vector<8x10xf32> to vector<8x1xf32>
    %38 = vector.extract_strided_slice %1 {offsets = [6, 0], sizes = [1, 10], strides = [1, 1]} : vector<10x10xf32> to vector<1x10xf32>
    %39 = vector.broadcast %37 : vector<8x1xf32> to vector<8x10xf32>
    %40 = vector.broadcast %38 : vector<1x10xf32> to vector<8x10xf32>
    %41 = arith.mulf %39, %40 : vector<8x10xf32>
    %42 = arith.addf %36, %41 : vector<8x10xf32>
    %43 = vector.extract_strided_slice %0 {offsets = [0, 7], sizes = [8, 1], strides = [1, 1]} : vector<8x10xf32> to vector<8x1xf32>
    %44 = vector.extract_strided_slice %1 {offsets = [7, 0], sizes = [1, 10], strides = [1, 1]} : vector<10x10xf32> to vector<1x10xf32>
    %45 = vector.broadcast %43 : vector<8x1xf32> to vector<8x10xf32>
    %46 = vector.broadcast %44 : vector<1x10xf32> to vector<8x10xf32>
    %47 = arith.mulf %45, %46 : vector<8x10xf32>
    %48 = arith.addf %42, %47 : vector<8x10xf32>
    %49 = vector.extract_strided_slice %0 {offsets = [0, 8], sizes = [8, 1], strides = [1, 1]} : vector<8x10xf32> to vector<8x1xf32>
    %50 = vector.extract_strided_slice %1 {offsets = [8, 0], sizes = [1, 10], strides = [1, 1]} : vector<10x10xf32> to vector<1x10xf32>
    %51 = vector.broadcast %49 : vector<8x1xf32> to vector<8x10xf32>
    %52 = vector.broadcast %50 : vector<1x10xf32> to vector<8x10xf32>
    %53 = arith.mulf %51, %52 : vector<8x10xf32>
    %54 = arith.addf %48, %53 : vector<8x10xf32>
    %55 = vector.extract_strided_slice %0 {offsets = [0, 9], sizes = [8, 1], strides = [1, 1]} : vector<8x10xf32> to vector<8x1xf32>
    %56 = vector.extract_strided_slice %1 {offsets = [9, 0], sizes = [1, 10], strides = [1, 1]} : vector<10x10xf32> to vector<1x10xf32>
    %57 = vector.broadcast %55 : vector<8x1xf32> to vector<8x10xf32>
    %58 = vector.broadcast %56 : vector<1x10xf32> to vector<8x10xf32>
    %59 = arith.mulf %57, %58 : vector<8x10xf32>
    %60 = arith.addf %54, %59 : vector<8x10xf32>
    %cst = arith.constant dense<0.000000e+00> : vector<10xf32>
    %61 = vector.multi_reduction <add>, %60, %cst [0] : vector<8x10xf32> to vector<10xf32>
    %62 = vector.shape_cast %61 : vector<10xf32> to vector<1x10xf32>
    %cst_3 = arith.constant 1.250000e-01 : f32
    %63 = vector.broadcast %cst_3 : f32 to vector<1x10xf32>
    %64 = arith.mulf %62, %63 : vector<1x10xf32>
    %65 = vector.broadcast %64 : vector<1x10xf32> to vector<8x10xf32>
    %66 = arith.subf %60, %65 : vector<8x10xf32>
    %67 = arith.mulf %66, %66 : vector<8x10xf32>
    %cst_4 = arith.constant dense<0.000000e+00> : vector<10xf32>
    %68 = vector.multi_reduction <add>, %67, %cst_4 [0] : vector<8x10xf32> to vector<10xf32>
    %69 = vector.shape_cast %68 : vector<10xf32> to vector<1x10xf32>
    %cst_5 = arith.constant 1.250000e-01 : f32
    %70 = vector.broadcast %cst_5 : f32 to vector<1x10xf32>
    %71 = arith.mulf %69, %70 : vector<1x10xf32>
    %cst_6 = arith.constant 9.99999974E-6 : f32
    %72 = vector.broadcast %cst_6 : f32 to vector<1x10xf32>
    %73 = arith.addf %71, %72 : vector<1x10xf32>
    %74 = math.rsqrt %73 : vector<1x10xf32>
    %75 = vector.broadcast %74 : vector<1x10xf32> to vector<8x10xf32>
    %76 = arith.mulf %66, %75 : vector<8x10xf32>
    %c0_7 = arith.constant 0 : index
    %c0_8 = arith.constant 0 : index
    %77 = vector.load %arg2[%c0_7, %c0_8] : memref<8x10xf32, #tpu.memory_space<vmem>>, vector<8x10xf32>
    tpu.vector_store %arg2[%c0_7, %c0_8], %76 {strides = array<i32>} : memref<8x10xf32, #tpu.memory_space<vmem>>, vector<8x10xf32>,
    return
  }
}

</mosaic_0001>

<bundles_post_ra>
// kernel: buffer_model3_forward.1
= control target key start
LH: loop header
LB: loop body
LE: loop exit
PB: predicated region body
PF: predicated region fallthrough
CT: control target
= control target key end

     0   :  { %7 = vsyncpa [#allocation3], 0  ;;  %s316_s0 = inlined_call_operand.hbm [shape: f32[8,10], index: 0, kind: input, shape index: {}]   ;;  %s317_s1 = inlined_call_operand.hbm [shape: f32[10,10], index: 1, kind: input, shape index: {}]   ;;  %s318_s2 = inlined_call_operand.hbm [shape: f32[8,10], index: 2, kind: output, shape index: {}]  }
   0x1   :  { %8 = vsyncpa [#allocation6], 0 }
   0x2   :  { %9 = vsyncpa [#allocation4], 0  ;;  %s274_s9 = smov [#allocation2]   ;;  %s275_s11 = smov [#allocation5]  }
   0x3   :  { %s16_s10 = sshll.u32 %s274_s9, 4  ;;  %s25_s12 = sshll.u32 %s275_s11, 4  ;;  %s17_s10 = int_to_ptr.vmem [resolvable:$true] %s16_s10  ;;  %s26_s12 = int_to_ptr.vmem [resolvable:$true] %s25_s12 }
   0x4   :  { %s216_s13 = scalar_lea.vmem %s17_s10, 128  ;;  %p221_p1 = scmp.lt.s32.totalorder %s17_s10, %s17_s10 }
   0x5   :  { %p217_p0 = scmp.ne.s32.totalorder %s17_s10, %s216_s13  ;;  %p222_p2 = scmp.lt.s32.totalorder %s216_s13, %s216_s13 }
   0x7   :  { %p223_p3 = por %p222_p2, %p221_p1 }
   0x9   :  { %p224_p4 = pnand %p223_p3, %p217_p0 }
   0xb   :  { %227 = shalt.err (!%p224_p4)
}
   0xc   :  { %19 = dma.hbm_to_vmem [thread:$0]  %s316_s0, 128, %s17_s10, [#allocation3]  }
   0xd   :  { %s236_s16 = scalar_lea.vmem %s26_s12, 256  ;;  %p241_p6 = scmp.lt.s32.totalorder %s26_s12, %s26_s12 }
   0xe   :  { %p237_p5 = scmp.ne.s32.totalorder %s26_s12, %s236_s16  ;;  %p242_p7 = scmp.lt.s32.totalorder %s236_s16, %s236_s16 }
  0x10   :  { %p243_p8 = por %p242_p7, %p241_p6 }
  0x12   :  { %p244_p9 = pnand %p243_p8, %p237_p5 }
  0x14   :  { %247 = shalt.err (!%p244_p9)
}
  0x15   :  { %s276_s17 = smov 128   ;;  %s277_s18 = smov 8  }
  0x16   :  { %31 = dma.hbm_to_vmem [thread:$0]  %s317_s1, 256, %s26_s12, [#allocation6], %s276_s17, %s276_s17, %s277_s18  }
  0x17   :  { %268 = dma.done.wait [#allocation3], 128  }
  0x18   :  { %269 = vsyncadd [#allocation3], 4294967168 }
  0x19   :  { %270 = dma.done.wait [#allocation6], 256  }
  0x1a   :  { %271 = vsyncadd [#allocation6], 4294967040  ;;  %v278_v0 = vmov 2   ;;  %v279_v1 = vmov 0   ;;  %v38_v2 = vld [vmem:[#allocation2] sm:$0xff]  ;;  %v280_v3 = vmov 3   ;;  %v46_v11 = vlaneseq }
  0x1b   :  { %197 = vset.pattern.permute.xlu1 %v278_v0  ;;  %195 = vset.pattern.permute.xlu0 %v279_v1  ;;  %v281_v4 = vmov 1   ;;  %v282_v5 = vmov 4   ;;  %v283_v6 = vmov 5   ;;  %v284_v7 = vmov 6   ;;  %v39_v15 = vld [vmem:[#allocation5] sm:$0xff]  ;;  %s288_s0 = smov [#allocation7]  }
  0x1c   :  { %62 = vperm.xlu1 %197, %v38_v2   ;;  %43 = vperm.xlu0 %195, %v38_v2   ;;  %v285_v8 = vmov 8   ;;  %v286_v9 = vmov 7   ;;  %v287_v10 = vmov 9   ;;  %v47_v12 = vshrl.u32 %v46_v11, 7  ;;  %v40_v45 = vld [vmem:[#allocation5 + $0x8] sm:$0x3] }
  0x1d   :  { %vm141_vm0 = vcmask 80896   ;;  %s170_s1 = sshll.u32 %s288_s0, 4  ;;  %s171_s1 = int_to_ptr.vmem [resolvable:$true] %s170_s1 }
  0x1e   :  { %v48_v13 = vsub.s32 0, %v47_v12  ;;  %v57_v14 = vsub.s32 1, %v47_v12  ;;  %v67_v16 = vsub.s32 2, %v47_v12  ;;  %v77_v20 = vsub.s32 3, %v47_v12  ;;  %s248_s21 = scalar_lea.vmem %s171_s1, 128  ;;  %p253_p11 = scmp.lt.s32.totalorder %s171_s1, %s171_s1 }
  0x1f   :  { %v87_v22 = vsub.s32 4, %v47_v12  ;;  %v97_v27 = vsub.s32 5, %v47_v12  ;;  %v107_v34 = vsub.s32 6, %v47_v12  ;;  %v117_v43 = vsub.s32 7, %v47_v12  ;;  %p249_p10 = scmp.ne.s32.totalorder %s171_s1, %s248_s21  ;;  %p254_p12 = scmp.lt.s32.totalorder %s248_s21, %s248_s21 }
  0x20   :  { %198 = vset.pattern.permute.xlu1 %v280_v3  ;;  %196 = vset.pattern.permute.xlu0 %v281_v4  ;;  %v49_v18 = vrot.slane %v39_v15, %v48_v13  ;;  %v58_v21 = vrot.slane %v39_v15, %v57_v14  ;;  %v68_v23 = vrot.slane %v39_v15, %v67_v16 }
  0x21   :  { %72 = vperm.xlu1 %198, %v38_v2   ;;  %52 = vperm.xlu0 %196, %v38_v2   ;;  %v78_v28 = vrot.slane %v39_v15, %v77_v20  ;;  %v88_v30 = vrot.slane %v39_v15, %v87_v22  ;;  %v98_v33 = vrot.slane %v39_v15, %v97_v27  ;;  %p255_p13 = por %p254_p12, %p253_p11 }
  0x22   :  { %v108_v42 = vrot.slane %v39_v15, %v107_v34  ;;  %v118_v49 = vrot.slane %v39_v15, %v117_v43  ;;  %v128_v50 = vrot.slane %v40_v45, %v48_v13  ;;  %v138_v56 = vrot.slane %v40_v45, %v57_v14 }
  0x23   :  { %p256_p0 = pnand %p255_p13, %p249_p10 }
  0x25   :  { %199 = vset.pattern.permute.xlu1 %v282_v5  ;;  %200 = vset.pattern.permute.xlu0 %v283_v6 }
  0x26   :  { %82 = vperm.xlu1 %199, %v38_v2   ;;  %92 = vperm.xlu0 %200, %v38_v2  }
  0x2a   :  { %201 = vset.pattern.permute.xlu1 %v284_v7  ;;  %203 = vset.pattern.permute.xlu0 %v285_v8 }
  0x2b   :  { %102 = vperm.xlu1 %201, %v38_v2   ;;  %122 = vperm.xlu0 %203, %v38_v2  }
  0x2f   :  { %202 = vset.pattern.permute.xlu1 %v286_v9  ;;  %205 = vset.pattern.permute.xlu0 %v287_v10 }
  0x30   :  { %112 = vperm.xlu1 %202, %v38_v2  }
  0x34   :  { %204 = vset.pattern.permute.xlu1 %v287_v10 }
  0x35   :  { %132 = vperm.xlu1 %204, %v38_v2  }
  0x97   :  { %v63_v17 = vpop.permute.xlu1 %62  ;;  %v44_v19 = vpop.permute.xlu0 %43 }
  0x98   :  { %v50_v24 = vmul.f32 %v49_v18, %v44_v19  ;;  %v69_v31 = vmul.f32 %v68_v23, %v63_v17 }
  0x9c   :  { %v73_v25 = vpop.permute.xlu1 %72  ;;  %v53_v26 = vpop.permute.xlu0 %52 }
  0x9d   :  { %v59_v29 = vmul.f32 %v58_v21, %v53_v26  ;;  %v79_v35 = vmul.f32 %v78_v28, %v73_v25 }
  0x9f   :  { %v60_v32 = vadd.f32 %v59_v29, %v50_v24 }
  0xa1   :  { %v70_v36 = vadd.f32 %v69_v31, %v60_v32  ;;  %v83_v37 = vpop.permute.xlu1 %82  ;;  %v93_v38 = vpop.permute.xlu0 %92 }
  0xa2   :  { %v89_v39 = vmul.f32 %v88_v30, %v83_v37  ;;  %v99_v41 = vmul.f32 %v98_v33, %v93_v38 }
  0xa3   :  { %v80_v40 = vadd.f32 %v79_v35, %v70_v36 }
  0xa5   :  { %v90_v44 = vadd.f32 %v89_v39, %v80_v40 }
  0xa6   :  { %v103_v46 = vpop.permute.xlu1 %102  ;;  %v123_v51 = vpop.permute.xlu0 %122 }
  0xa7   :  { %v100_v47 = vadd.f32 %v99_v41, %v90_v44  ;;  %v109_v48 = vmul.f32 %v108_v42, %v103_v46  ;;  %v129_v55 = vmul.f32 %v128_v50, %v123_v51 }
  0xa9   :  { %v110_v53 = vadd.f32 %v109_v48, %v100_v47 }
  0xab   :  { %v113_v52 = vpop.permute.xlu1 %112 }
  0xac   :  { %v119_v54 = vmul.f32 %v118_v49, %v113_v52 }
  0xae   :  { %v120_v57 = vadd.f32 %v119_v54, %v110_v53 }
  0xb0   :  { %v130_v58 = vadd.f32 %v129_v55, %v120_v57  ;;  %v133_v59 = vpop.permute.xlu1 %132 }
  0xb1   :  { %v139_v60 = vmul.f32 %v138_v56, %v133_v59 }
  0xb3   :  { %v140_v61 = vadd.f32 %v139_v60, %v130_v58 }
  0xb5   :  { %v142_v62 = vsel %vm141_vm0, %v140_v61, 0.0 }
  0xb6   :  { %v143_v63 = vrot.slane %v142_v62, 4 }
  0xb8   :  { %v144_v0 = vadd.f32 %v143_v63, %v142_v62 }
  0xba   :  { %v145_v1 = vrot.slane %v144_v0, 2 }
  0xbc   :  { %v146_v2 = vadd.f32 %v145_v1, %v144_v0 }
  0xbe   :  { %v147_v3 = vrot.slane %v146_v2, 1 }
  0xc0   :  { %v148_v4 = vadd.f32 %v147_v3, %v146_v2 }
  0xc2   :  { %v149_v5 = vmul.f32 0.125, %v148_v4 }
  0xc4   :  { %v150_v6 = vsub.f32 %v140_v61, %v149_v5 }
  0xc6   :  { %v151_v7 = vmul.f32 %v150_v6, %v150_v6 }
  0xc8   :  { %v152_v8 = vsel %vm141_vm0, %v151_v7, 0.0 }
  0xc9   :  { %v153_v9 = vrot.slane %v152_v8, 4 }
  0xcb   :  { %v154_v10 = vadd.f32 %v153_v9, %v152_v8 }
  0xcd   :  { %v155_v11 = vrot.slane %v154_v10, 2 }
  0xcf   :  { %v156_v12 = vadd.f32 %v155_v11, %v154_v10 }
  0xd1   :  { %v157_v13 = vrot.slane %v156_v12, 1 }
  0xd3   :  { %v158_v14 = vadd.f32 %v157_v13, %v156_v12 }
  0xd5   :  { %v159_v15 = vmul.f32 0.125, %v158_v14 }
  0xd7   :  { %v160_v16 = vadd.f32 1e-05, %v159_v15 }
  0xd9   :  { %206 = vrsqrt.f32 %v160_v16 }
  0xe6   :  { %v207_v17 = vpop.eup %206 }
  0xe7   :  { %v162_v18 = vmul.f32 %v207_v17, %v150_v6 }
  0xe9   :  { %163 = vst.msk [vmem:[#allocation7] sm:$0xff] %vm141_vm0, %v162_v18 }
  0xea   :  { %259 = shalt.err (!%p256_p0)
}
  0xeb   :  { %173 = dma.vmem_to_hbm [thread:$0]  %s171_s1, 128, %s318_s2, [#allocation4]  }
  0xec   :  { %272 = dma.done.wait [#allocation4], 128  }
  0xed   :  { %273 = vsyncadd [#allocation4], 4294967168 }
  0xee   :  { %177 = vsyncpa [#allocation3], 1 }
  0xef   :  { %178 = vsyncpa [#allocation6], 1 }
  0xf0   :  { %179 = vsyncpa [#allocation4], 1 }

</bundles_post_ra>
